<compile_context>
chip_gen: v7x
topology: tpu7x:2x2x1
jax: 0.10.0
libtpu: 0.0.40
codegen_flags: <defaults>
</compile_context>

<pallas_src>
import jax
import jax.numpy as jnp
from jax.experimental import pallas as pl
from jax.experimental.pallas import tpu as pltpu

EPS = 1e-5          # PyTorch BatchNorm2d default
NEG_SLOPE = 0.2     # LeakyReLU slope used in DIP down blocks
LANE = 128
NSPLIT = 2          # outer "parallel" split of the row-band axis (megacore)


def _conv_stats_kernel(e_ref, o_ref, w0_ref, w1_ref, w2_ref,
                       y_ref, sum_ref, ssq_ref):
    # e: (TR, OW+1, K) bf16   o: (TR, OW, K) bf16   w*: (K, Co_pad) bf16
    # y: (TR*OW, Co_pad) f32  sum/ssq: (1, 1, Co_pad) f32 grid-resident accumulators.
    i = pl.program_id(1)
    tr, ow1, k = e_ref.shape
    ow = ow1 - 1
    m = tr * ow

    @pl.when(i == 0)
    def _init():
        sum_ref[...] = jnp.zeros_like(sum_ref)
        ssq_ref[...] = jnp.zeros_like(ssq_ref)

    # 3x3 stride-2 conv as 3 accumulated tap-matmuls (kw = 0, 1, 2), K = 3*C_in each.
    lhs0 = e_ref[:, pl.ds(0, ow), :].reshape(m, k)   # even cols, offset 0 -> kw 0
    lhs1 = o_ref[...].reshape(m, k)                  # odd cols            -> kw 1
    lhs2 = e_ref[:, pl.ds(1, ow), :].reshape(m, k)   # even cols, offset 1 -> kw 2

    y = jnp.dot(lhs0, w0_ref[...], preferred_element_type=jnp.float32)
    y = y + jnp.dot(lhs1, w1_ref[...], preferred_element_type=jnp.float32)
    y = y + jnp.dot(lhs2, w2_ref[...], preferred_element_type=jnp.float32)
    y_ref[...] = y

    # BN statistics in the same pass (f32 sum & sum-of-squares per channel).
    sum_ref[...] += jnp.sum(y, axis=0, keepdims=True)[None]
    ssq_ref[...] += jnp.sum(y * y, axis=0, keepdims=True)[None]


def _bn_act_kernel(y_ref, scale_ref, shift_ref, out_ref):
    # Folded BN (single per-channel FMA) + LeakyReLU(0.2), all f32.
    z = y_ref[...] * scale_ref[...] + shift_ref[...]
    out_ref[...] = jnp.where(z >= 0.0, z, NEG_SLOPE * z)


def _choose_tile_r(R, OW, K, Co_pad):
    """Largest row-band tile whose double-buffered blocks (plus in-kernel
    temporaries) stay within ~36 MiB — sized for v7x's 64 MiB VMEM; comfortably
    fits v5e/v6e as well."""
    budget = 36 * 1024 * 1024
    cap = max(8, ((R // 4) // 8) * 8)        # keep a few grid steps for pipelining
    t = 8
    while 2 * t <= cap:
        nt = 2 * t
        need = (2 * 2 * nt * (OW + 1) * K * 2     # e + o blocks, bf16, double-buffered
                + 2 * nt * OW * Co_pad * 4        # y block, f32, double-buffered
                + 3 * 2 * K * Co_pad * 2          # three tap weights, bf16
                + 3 * nt * OW * K * 2             # materialized lhs slabs (bf16)
                + nt * OW * Co_pad * 4)           # live f32 accumulator value
        if need > budget or nt * OW > 8192:
            break
        t = nt
    return t


def down_block(x_nchw, w_oihw, gamma, beta):
    """Conv2d(3x3, stride 2, pad 1, no bias) + BatchNorm2d(train batch stats)
    + LeakyReLU(0.2). NCHW in / NCHW out (PyTorch contract)."""
    N, C_in, H, W = x_nchw.shape
    C_out = w_oihw.shape[0]
    OH = (H - 1) // 2 + 1
    OW = (W - 1) // 2 + 1
    K = 3 * C_in
    Co_pad = ((C_out + LANE - 1) // LANE) * LANE

    # ---- layout prep (plain JAX): NHWC, spatial zero pad, row-band stacking and
    #      column-parity de-interleave so the kernel only needs contiguous windows.
    x = jnp.transpose(x_nchw, (0, 2, 3, 1)).astype(jnp.bfloat16)         # NHWC, bf16
    xp = jnp.pad(x, ((0, 0), (1, 1), (1, 1), (0, 0)))                    # (N,H+2,W+2,C)
    band = jnp.concatenate([xp[:, r:r + 2 * OH:2] for r in range(3)],
                           axis=-1)                                      # (N,OH,W+2,3C)
    e = band[:, :, 0:2 * OW + 1:2, :]          # even cols -> kw 0 and 2  (N,OH,OW+1,3C)
    o = band[:, :, 1:2 * OW + 1:2, :]          # odd  cols -> kw 1        (N,OH,OW,3C)

    R = N * OH
    e = e.reshape(R, OW + 1, K)
    o = o.reshape(R, OW, K)

    tile_r = _choose_tile_r(R, OW, K, Co_pad)
    R_pad = -(-R // (NSPLIT * tile_r)) * (NSPLIT * tile_r)
    if R_pad > R:  # zero rows contribute 0 to sum/sumsq; stats use the true count
        e = jnp.pad(e, ((0, R_pad - R), (0, 0), (0, 0)))
        o = jnp.pad(o, ((0, R_pad - R), (0, 0), (0, 0)))
    T = R_pad // (NSPLIT * tile_r)
    M_true = N * OH * OW
    M_pad = R_pad * OW

    # PyTorch OIHW weight -> one (3*C_in, Co_pad) bf16 matrix per kw tap.
    wt = jnp.transpose(w_oihw, (2, 1, 0, 3)).astype(jnp.bfloat16)        # (KH,Ci,Co,KW)
    w_taps = [jnp.pad(wt[:, :, :, kw].reshape(K, C_out),
                      ((0, 0), (0, Co_pad - C_out))) for kw in range(3)]

    # ---- pass 1: fused tap-matmul conv + per-channel sum / sum-of-squares ----
    y, psum, pssq = pl.pallas_call(
        _conv_stats_kernel,
        grid=(NSPLIT, T),
        in_specs=[
            pl.BlockSpec((tile_r, OW + 1, K), lambda p, i: (p * T + i, 0, 0)),
            pl.BlockSpec((tile_r, OW, K), lambda p, i: (p * T + i, 0, 0)),
            pl.BlockSpec((K, Co_pad), lambda p, i: (0, 0)),
            pl.BlockSpec((K, Co_pad), lambda p, i: (0, 0)),
            pl.BlockSpec((K, Co_pad), lambda p, i: (0, 0)),
        ],
        out_specs=[
            pl.BlockSpec((tile_r * OW, Co_pad), lambda p, i: (p * T + i, 0)),
            pl.BlockSpec((1, 1, Co_pad), lambda p, i: (p, 0, 0)),
            pl.BlockSpec((1, 1, Co_pad), lambda p, i: (p, 0, 0)),
        ],
        out_shape=[
            jax.ShapeDtypeStruct((M_pad, Co_pad), jnp.float32),
            jax.ShapeDtypeStruct((NSPLIT, 1, Co_pad), jnp.float32),
            jax.ShapeDtypeStruct((NSPLIT, 1, Co_pad), jnp.float32),
        ],
        compiler_params=pltpu.CompilerParams(
            dimension_semantics=("parallel", "arbitrary"),
            vmem_limit_bytes=48 * 1024 * 1024),
    )(e, o, *w_taps)

    # ---- tiny finalize (C_out scalars): fold train-mode BN into one per-channel FMA
    gamma_p = jnp.pad(gamma.astype(jnp.float32), (0, Co_pad - C_out))
    beta_p = jnp.pad(beta.astype(jnp.float32), (0, Co_pad - C_out))
    s_tot = jnp.sum(psum[:, 0, :], axis=0)
    q_tot = jnp.sum(pssq[:, 0, :], axis=0)
    mean = s_tot / M_true
    var = jnp.maximum(q_tot / M_true - mean * mean, 0.0)   # biased var (train BN)
    scale = gamma_p * jax.lax.rsqrt(var + EPS)
    shift = beta_p - mean * scale

    # ---- pass 2: apply folded BN + LeakyReLU on lane-dense tiles ----
    tile_m2 = tile_r * OW
    out = pl.pallas_call(
        _bn_act_kernel,
        grid=(M_pad // tile_m2,),
        in_specs=[
            pl.BlockSpec((tile_m2, Co_pad), lambda j: (j, 0)),
            pl.BlockSpec((1, Co_pad), lambda j: (0, 0)),
            pl.BlockSpec((1, Co_pad), lambda j: (0, 0)),
        ],
        out_specs=pl.BlockSpec((tile_m2, Co_pad), lambda j: (j, 0)),
        out_shape=jax.ShapeDtypeStruct((M_pad, Co_pad), jnp.float32),
        compiler_params=pltpu.CompilerParams(
            dimension_semantics=("parallel",),
            vmem_limit_bytes=48 * 1024 * 1024),
    )(y, scale.reshape(1, Co_pad), shift.reshape(1, Co_pad))

    out = out[:M_true, :C_out].reshape(N, OH, OW, C_out)
    # TODO(synk): keep NHWC end-to-end if the surrounding model allows; the module
    #             contract here is NCHW in / NCHW out, so transpose at the boundary.
    return jnp.transpose(out, (0, 3, 1, 2))


if __name__ == "__main__":
    key = jax.random.PRNGKey(0)
    k_x, k_w, k_g, k_b = jax.random.split(key, 4)

    N, C_in, H, W = 2, 4, 16, 16
    C_out = 8

    x = jax.random.normal(k_x, (N, C_in, H, W), dtype=jnp.float32)
    w = 0.1 * jax.random.normal(k_w, (C_out, C_in, 3, 3), dtype=jnp.float32)
    gamma = 1.0 + 0.05 * jax.random.normal(k_g, (C_out,), dtype=jnp.float32)
    beta = 0.05 * jax.random.normal(k_b, (C_out,), dtype=jnp.float32)

    out = jax.jit(down_block)(x, w, gamma, beta)
    jax.block_until_ready(out)
    assert out.shape == (N, C_out, H // 2, W // 2), out.shape

    # f32 reference: conv(s=2,p=1,no bias) + train-mode BN + LeakyReLU(0.2)
    ref_y = jax.lax.conv_general_dilated(
        x, w, window_strides=(2, 2), padding=((1, 1), (1, 1)),
        dimension_numbers=("NCHW", "OIHW", "NCHW"))
    mu = jnp.mean(ref_y, axis=(0, 2, 3), keepdims=True)
    var = jnp.mean((ref_y - mu) ** 2, axis=(0, 2, 3), keepdims=True)
    ref = (ref_y - mu) * jax.lax.rsqrt(var + EPS)
    ref = ref * gamma.reshape(1, -1, 1, 1) + beta.reshape(1, -1, 1, 1)
    ref = jnp.where(ref >= 0, ref, NEG_SLOPE * ref)
    err = float(jnp.max(jnp.abs(out - ref)))
    assert err < 5e-2, f"max abs err {err}"
    print("KERNEL_OK")
</pallas_src>

<mosaic_0001>
module attributes {stable_mosaic.version = 11 : i64} {
  func.func @_conv_stats_kernel(%arg0: i32, %arg1: i32, %arg2: memref<8x9x12xbf16, #tpu.memory_space<vmem>>, %arg3: memref<8x8x12xbf16, #tpu.memory_space<vmem>>, %arg4: memref<12x128xbf16, #tpu.memory_space<vmem>>, %arg5: memref<12x128xbf16, #tpu.memory_space<vmem>>, %arg6: memref<12x128xbf16, #tpu.memory_space<vmem>>, %arg7: memref<64x128xf32, #tpu.memory_space<vmem>>, %arg8: memref<1x1x128xf32, #tpu.memory_space<vmem>>, %arg9: memref<1x1x128xf32, #tpu.memory_space<vmem>>) attributes {dimension_semantics = [#tpu.dimension_semantics<parallel>, #tpu.dimension_semantics<arbitrary>], iteration_bounds = array<i64: 2, 1>, scalar_prefetch = 0 : i64, scratch_operands = 0 : i64, tpu.core_type = #tpu.core_type<tc>, window_params = [{transform_indices = @transform_0, window_bounds = array<i64: 8, 9, 12>}, {transform_indices = @transform_1, window_bounds = array<i64: 8, 8, 12>}, {pipeline_mode = #tpu.pipeline_mode<synchronous>, transform_indices = @transform_2, window_bounds = array<i64: 12, 128>}, {pipeline_mode = #tpu.pipeline_mode<synchronous>, transform_indices = @transform_3, window_bounds = array<i64: 12, 128>}, {pipeline_mode = #tpu.pipeline_mode<synchronous>, transform_indices = @transform_4, window_bounds = array<i64: 12, 128>}, {transform_indices = @transform_5, window_bounds = array<i64: 64, 128>}, {transform_indices = @transform_6, window_bounds = array<i64: 1, 1, 128>}, {transform_indices = @transform_7, window_bounds = array<i64: 1, 1, 128>}]} {
    %c0_i32 = arith.constant 0 : i32
    %0 = arith.cmpi eq, %arg1, %c0_i32 : i32
    %1 = arith.extui %0 : i1 to i32
    %c0_i32_0 = arith.constant 0 : i32
    %2 = arith.cmpi ne, %1, %c0_i32_0 : i32
    scf.if %2 {
      %cst_32 = arith.constant 0.000000e+00 : f32
      %31 = vector.broadcast %cst_32 : f32 to vector<1x1x128xf32>
      %c0_33 = arith.constant 0 : index
      %c0_34 = arith.constant 0 : index
      %c0_35 = arith.constant 0 : index
      %32 = vector.load %arg8[%c0_33, %c0_34, %c0_35] : memref<1x1x128xf32, #tpu.memory_space<vmem>>, vector<1x1x128xf32>
      tpu.vector_store %arg8[%c0_33, %c0_34, %c0_35], %31 {strides = array<i32>} : memref<1x1x128xf32, #tpu.memory_space<vmem>>, vector<1x1x128xf32>,
      %cst_36 = arith.constant 0.000000e+00 : f32
      %33 = vector.broadcast %cst_36 : f32 to vector<1x1x128xf32>
      %c0_37 = arith.constant 0 : index
      %c0_38 = arith.constant 0 : index
      %c0_39 = arith.constant 0 : index
      %34 = vector.load %arg9[%c0_37, %c0_38, %c0_39] : memref<1x1x128xf32, #tpu.memory_space<vmem>>, vector<1x1x128xf32>
      tpu.vector_store %arg9[%c0_37, %c0_38, %c0_39], %33 {strides = array<i32>} : memref<1x1x128xf32, #tpu.memory_space<vmem>>, vector<1x1x128xf32>,
    } else {
    }
    %c0 = arith.constant 0 : index
    %c0_1 = arith.constant 0 : index
    %c0_2 = arith.constant 0 : index
    %3 = vector.load %arg2[%c0, %c0_1, %c0_2] : memref<8x9x12xbf16, #tpu.memory_space<vmem>>, vector<8x8x12xbf16>
    %4 = vector.shape_cast %3 : vector<8x8x12xbf16> to vector<64x12xbf16>
    %c0_3 = arith.constant 0 : index
    %c0_4 = arith.constant 0 : index
    %c0_5 = arith.constant 0 : index
    %5 = vector.load %arg3[%c0_3, %c0_4, %c0_5] : memref<8x8x12xbf16, #tpu.memory_space<vmem>>, vector<8x8x12xbf16>
    %6 = vector.shape_cast %5 : vector<8x8x12xbf16> to vector<64x12xbf16>
    %c0_6 = arith.constant 0 : index
    %c1 = arith.constant 1 : index
    %c0_7 = arith.constant 0 : index
    %7 = vector.load %arg2[%c0_6, %c1, %c0_7] : memref<8x9x12xbf16, #tpu.memory_space<vmem>>, vector<8x8x12xbf16>
    %8 = vector.shape_cast %7 : vector<8x8x12xbf16> to vector<64x12xbf16>
    %c0_8 = arith.constant 0 : index
    %c0_9 = arith.constant 0 : index
    %9 = vector.load %arg4[%c0_8, %c0_9] : memref<12x128xbf16, #tpu.memory_space<vmem>>, vector<12x128xbf16>
    %cst = arith.constant dense<0.000000e+00> : vector<64x128xf32>
    %10 = tpu.matmul %4, %9, %cst {dimension_numbers = #tpu.dot_dimension_numbers<[1], [0], [0], [1], [0, 0, 1, 1], [], []>} : vector<64x12xbf16>, vector<12x128xbf16>, vector<64x128xf32> -> vector<64x128xf32>
    %c0_10 = arith.constant 0 : index
    %c0_11 = arith.constant 0 : index
    %11 = vector.load %arg5[%c0_10, %c0_11] : memref<12x128xbf16, #tpu.memory_space<vmem>>, vector<12x128xbf16>
    %cst_12 = arith.constant dense<0.000000e+00> : vector<64x128xf32>
    %12 = tpu.matmul %6, %11, %cst_12 {dimension_numbers = #tpu.dot_dimension_numbers<[1], [0], [0], [1], [0, 0, 1, 1], [], []>} : vector<64x12xbf16>, vector<12x128xbf16>, vector<64x128xf32> -> vector<64x128xf32>
    %13 = arith.addf %10, %12 : vector<64x128xf32>
    %c0_13 = arith.constant 0 : index
    %c0_14 = arith.constant 0 : index
    %14 = vector.load %arg6[%c0_13, %c0_14] : memref<12x128xbf16, #tpu.memory_space<vmem>>, vector<12x128xbf16>
    %cst_15 = arith.constant dense<0.000000e+00> : vector<64x128xf32>
    %15 = tpu.matmul %8, %14, %cst_15 {dimension_numbers = #tpu.dot_dimension_numbers<[1], [0], [0], [1], [0, 0, 1, 1], [], []>} : vector<64x12xbf16>, vector<12x128xbf16>, vector<64x128xf32> -> vector<64x128xf32>
    %16 = arith.addf %13, %15 : vector<64x128xf32>
    %c0_16 = arith.constant 0 : index
    %c0_17 = arith.constant 0 : index
    %17 = vector.load %arg7[%c0_16, %c0_17] : memref<64x128xf32, #tpu.memory_space<vmem>>, vector<64x128xf32>
    tpu.vector_store %arg7[%c0_16, %c0_17], %16 {strides = array<i32>} : memref<64x128xf32, #tpu.memory_space<vmem>>, vector<64x128xf32>,
    %c0_18 = arith.constant 0 : index
    %c0_19 = arith.constant 0 : index
    %c0_20 = arith.constant 0 : index
    %18 = vector.load %arg8[%c0_18, %c0_19, %c0_20] : memref<1x1x128xf32, #tpu.memory_space<vmem>>, vector<1x1x128xf32>
    %cst_21 = arith.constant dense<0.000000e+00> : vector<128xf32>
    %19 = vector.multi_reduction <add>, %16, %cst_21 [0] : vector<64x128xf32> to vector<128xf32>
    %20 = vector.shape_cast %19 : vector<128xf32> to vector<1x128xf32>
    %21 = vector.shape_cast %20 : vector<1x128xf32> to vector<1x1x128xf32>
    %22 = arith.addf %18, %21 : vector<1x1x128xf32>
    %c0_22 = arith.constant 0 : index
    %c0_23 = arith.constant 0 : index
    %c0_24 = arith.constant 0 : index
    %23 = vector.load %arg8[%c0_22, %c0_23, %c0_24] : memref<1x1x128xf32, #tpu.memory_space<vmem>>, vector<1x1x128xf32>
    tpu.vector_store %arg8[%c0_22, %c0_23, %c0_24], %22 {strides = array<i32>} : memref<1x1x128xf32, #tpu.memory_space<vmem>>, vector<1x1x128xf32>,
    %c0_25 = arith.constant 0 : index
    %c0_26 = arith.constant 0 : index
    %c0_27 = arith.constant 0 : index
    %24 = vector.load %arg9[%c0_25, %c0_26, %c0_27] : memref<1x1x128xf32, #tpu.memory_space<vmem>>, vector<1x1x128xf32>
    %25 = arith.mulf %16, %16 : vector<64x128xf32>
    %cst_28 = arith.constant dense<0.000000e+00> : vector<128xf32>
    %26 = vector.multi_reduction <add>, %25, %cst_28 [0] : vector<64x128xf32> to vector<128xf32>
    %27 = vector.shape_cast %26 : vector<128xf32> to vector<1x128xf32>
    %28 = vector.shape_cast %27 : vector<1x128xf32> to vector<1x1x128xf32>
    %29 = arith.addf %24, %28 : vector<1x1x128xf32>
    %c0_29 = arith.constant 0 : index
    %c0_30 = arith.constant 0 : index
    %c0_31 = arith.constant 0 : index
    %30 = vector.load %arg9[%c0_29, %c0_30, %c0_31] : memref<1x1x128xf32, #tpu.memory_space<vmem>>, vector<1x1x128xf32>
    tpu.vector_store %arg9[%c0_29, %c0_30, %c0_31], %29 {strides = array<i32>} : memref<1x1x128xf32, #tpu.memory_space<vmem>>, vector<1x1x128xf32>,
    return
  }
  func.func @transform_0(%arg0: i32, %arg1: i32) -> (i32, i32, i32) {
    %c1_i32 = arith.constant 1 : i32
    %0 = arith.muli %arg0, %c1_i32 : i32
    %1 = arith.addi %0, %arg1 : i32
    %c0_i32 = arith.constant 0 : i32
    %c0_i32_0 = arith.constant 0 : i32
    %c0_i32_1 = arith.constant 0 : i32
    return %1, %c0_i32, %c0_i32_0 : i32, i32, i32
  }
  func.func @transform_1(%arg0: i32, %arg1: i32) -> (i32, i32, i32) {
    %c1_i32 = arith.constant 1 : i32
    %0 = arith.muli %arg0, %c1_i32 : i32
    %1 = arith.addi %0, %arg1 : i32
    %c0_i32 = arith.constant 0 : i32
    %c0_i32_0 = arith.constant 0 : i32
    %c0_i32_1 = arith.constant 0 : i32
    return %1, %c0_i32, %c0_i32_0 : i32, i32, i32
  }
  func.func @transform_2(%arg0: i32, %arg1: i32) -> (i32, i32) {
    %c0_i32 = arith.constant 0 : i32
    %c0_i32_0 = arith.constant 0 : i32
    %c0_i32_1 = arith.constant 0 : i32
    return %c0_i32, %c0_i32_0 : i32, i32
  }
  func.func @transform_3(%arg0: i32, %arg1: i32) -> (i32, i32) {
    %c0_i32 = arith.constant 0 : i32
    %c0_i32_0 = arith.constant 0 : i32
    %c0_i32_1 = arith.constant 0 : i32
    return %c0_i32, %c0_i32_0 : i32, i32
  }
  func.func @transform_4(%arg0: i32, %arg1: i32) -> (i32, i32) {
    %c0_i32 = arith.constant 0 : i32
    %c0_i32_0 = arith.constant 0 : i32
    %c0_i32_1 = arith.constant 0 : i32
    return %c0_i32, %c0_i32_0 : i32, i32
  }
  func.func @transform_5(%arg0: i32, %arg1: i32) -> (i32, i32) {
    %c1_i32 = arith.constant 1 : i32
    %0 = arith.muli %arg0, %c1_i32 : i32
    %1 = arith.addi %0, %arg1 : i32
    %c0_i32 = arith.constant 0 : i32
    %c0_i32_0 = arith.constant 0 : i32
    return %1, %c0_i32 : i32, i32
  }
  func.func @transform_6(%arg0: i32, %arg1: i32) -> (i32, i32, i32) {
    %c0_i32 = arith.constant 0 : i32
    %c0_i32_0 = arith.constant 0 : i32
    %c0_i32_1 = arith.constant 0 : i32
    return %arg0, %c0_i32, %c0_i32_0 : i32, i32, i32
  }
  func.func @transform_7(%arg0: i32, %arg1: i32) -> (i32, i32, i32) {
    %c0_i32 = arith.constant 0 : i32
    %c0_i32_0 = arith.constant 0 : i32
    %c0_i32_1 = arith.constant 0 : i32
    return %arg0, %c0_i32, %c0_i32_0 : i32, i32, i32
  }
}

module attributes {stable_mosaic.version = 11 : i64} {
  func.func @_bn_act_kernel(%arg0: i32, %arg1: memref<64x128xf32, #tpu.memory_space<vmem>>, %arg2: memref<1x128xf32, #tpu.memory_space<vmem>>, %arg3: memref<1x128xf32, #tpu.memory_space<vmem>>, %arg4: memref<64x128xf32, #tpu.memory_space<vmem>>) attributes {dimension_semantics = [#tpu.dimension_semantics<parallel>], iteration_bounds = array<i64: 2>, scalar_prefetch = 0 : i64, scratch_operands = 0 : i64, tpu.core_type = #tpu.core_type<tc>, window_params = [{transform_indices = @transform_0, window_bounds = array<i64: 64, 128>}, {pipeline_mode = #tpu.pipeline_mode<synchronous>, transform_indices = @transform_1, window_bounds = array<i64: 1, 128>}, {pipeline_mode = #tpu.pipeline_mode<synchronous>, transform_indices = @transform_2, window_bounds = array<i64: 1, 128>}, {transform_indices = @transform_3, window_bounds = array<i64: 64, 128>}]} {
    %c0 = arith.constant 0 : index
    %c0_0 = arith.constant 0 : index
    %0 = vector.load %arg1[%c0, %c0_0] : memref<64x128xf32, #tpu.memory_space<vmem>>, vector<64x128xf32>
    %c0_1 = arith.constant 0 : index
    %c0_2 = arith.constant 0 : index
    %1 = vector.load %arg2[%c0_1, %c0_2] : memref<1x128xf32, #tpu.memory_space<vmem>>, vector<1x128xf32>
    %2 = vector.broadcast %1 : vector<1x128xf32> to vector<64x128xf32>
    %3 = arith.mulf %0, %2 : vector<64x128xf32>
    %c0_3 = arith.constant 0 : index
    %c0_4 = arith.constant 0 : index
    %4 = vector.load %arg3[%c0_3, %c0_4] : memref<1x128xf32, #tpu.memory_space<vmem>>, vector<1x128xf32>
    %5 = vector.broadcast %4 : vector<1x128xf32> to vector<64x128xf32>
    %6 = arith.addf %3, %5 : vector<64x128xf32>
    %cst = arith.constant 0.000000e+00 : f32
    %7 = vector.broadcast %cst : f32 to vector<64x128xf32>
    %8 = arith.cmpf oge, %6, %7 : vector<64x128xf32>
    %cst_5 = arith.constant 2.000000e-01 : f32
    %9 = vector.broadcast %cst_5 : f32 to vector<64x128xf32>
    %10 = arith.mulf %9, %6 : vector<64x128xf32>
    %11 = arith.select %8, %6, %10 : vector<64x128xi1>, vector<64x128xf32>
    %c0_6 = arith.constant 0 : index
    %c0_7 = arith.constant 0 : index
    %12 = vector.load %arg4[%c0_6, %c0_7] : memref<64x128xf32, #tpu.memory_space<vmem>>, vector<64x128xf32>
    tpu.vector_store %arg4[%c0_6, %c0_7], %11 {strides = array<i32>} : memref<64x128xf32, #tpu.memory_space<vmem>>, vector<64x128xf32>,
    return
  }
  func.func @transform_0(%arg0: i32) -> (i32, i32) {
    %c0_i32 = arith.constant 0 : i32
    %c0_i32_0 = arith.constant 0 : i32
    return %arg0, %c0_i32 : i32, i32
  }
  func.func @transform_1(%arg0: i32) -> (i32, i32) {
    %c0_i32 = arith.constant 0 : i32
    %c0_i32_0 = arith.constant 0 : i32
    %c0_i32_1 = arith.constant 0 : i32
    return %c0_i32, %c0_i32_0 : i32, i32
  }
  func.func @transform_2(%arg0: i32) -> (i32, i32) {
    %c0_i32 = arith.constant 0 : i32
    %c0_i32_0 = arith.constant 0 : i32
    %c0_i32_1 = arith.constant 0 : i32
    return %c0_i32, %c0_i32_0 : i32, i32
  }
  func.func @transform_3(%arg0: i32) -> (i32, i32) {
    %c0_i32 = arith.constant 0 : i32
    %c0_i32_0 = arith.constant 0 : i32
    return %arg0, %c0_i32 : i32, i32
  }
}

</mosaic_0001>

<bundles_post_ra>
// kernel: squeeze.7
= control target key start
LH: loop header
LB: loop body
LE: loop exit
PB: predicated region body
PF: predicated region fallthrough
CT: control target
= control target key end

     0   :  { %vm50_vm0 = vcmask 64512   ;;  %s104_s0 = inlined_call_operand.vmem [shape: bf16[3,4,8,1], index: 0, kind: input, shape index: {}]   ;;  %s105_s1 = inlined_call_operand.vmem [shape: bf16[12,8], index: 1, kind: output, shape index: {}]  }
   0x1   :  { %v77_v0 = vld [vmem:[%s104_s0 + $0x2] sm:$0xf]   ;;  %v45_v1 = vld [vmem:[%s104_s0] sm:$0x3] }
   0x2   :  { %v17_v2 = vunpack.c.l.bf16 %v77_v0  ;;  %v46_v3 = vunpack.c.l.bf16 %v45_v1 }
   0x4   :  { %20 = vst [vmem:[#allocation1 + $0x8] ss:$8 sps:$4 sm:$0xff] %v17_v2   ;;  %48 = vst [vmem:[#allocation1] sm:$0xf] %v46_v3 }
   0xb   :  { %v49_v4 = vld [vmem:[#allocation1] sm:$0xf]   ;;  %v53_v5 = vld [vmem:[#allocation1 + $0x8] sm:$0xf]   ;;  %v58_v6 = vld [vmem:[#allocation1 + $0x10] sm:$0xf]  }
   0xc   :  { %51 = vst.msk [vmem:[#allocation0] sm:$0xf] %vm50_vm0, %v49_v4   ;;  %56 = vst.msk [vmem:[#allocation0 + $0x4] sm:$0xf] %vm50_vm0, %v53_v5  }
   0xd   :  { %61 = vst.msk [vmem:[#allocation0 + $0x8] sm:$0xf] %vm50_vm0, %v58_v6  }
  0x13   :  { %v66_v7 = vld [vmem:[#allocation0] sm:$0xff] }
  0x14   :  { %v71_v8 = vld [vmem:[#allocation0 + $0x8] sm:$0xff] }
  0x15   :  { %v83_v9 = vpack.c.bf16 %v71_v8, %v66_v7 }
  0x17   :  { %84 = vst [vmem:[%s105_s1] sm:$0xff] %v83_v9  }

// kernel: down_block.3
= control target key start
LH: loop header
LB: loop body
LE: loop exit
PB: predicated region body
PF: predicated region fallthrough
CT: control target
= control target key end

     0   :  { %s349_s12 = smov 0   ;;  %s382_s0 = inlined_call_operand.vmem [shape: f32[128,128], index: 0, kind: input, shape index: {}]   ;;  %s383_s1 = inlined_call_operand.vmem [shape: f32[1,128], index: 1, kind: input, shape index: {}]   ;;  %s384_s2 = inlined_call_operand.vmem [shape: f32[1,128], index: 2, kind: input, shape index: {}]   ;;  %s385_s3 = inlined_call_operand.vmem [shape: f32[128,128], index: 3, kind: output, shape index: {}]  }
   0x1 LB: > { %s300_s13 = sadd.s32 4294967295, %s327_s12   ;;  %p304_p0 = scmp.ge.s32.totalorder %s327_s12, 1  ;;  %s327_s12 = sphi %s349_s12, %s13_s12  }
   0x2   : > { %p138_p1 = scmp.lt.s32.totalorder %s327_s12, 3 }
   0x4   : > { %p139_p2 = pnand %p304_p0, %p138_p1 }
   0x5   : > { %s305_s14 = sshll.u32 (!%p139_p2), %s300_s13, 3  ;;  %v309_v0 = vld [vmem:[%s383_s1] ss:$0 sm:$0xff] (!%p139_p2) }
   0x6   : > { %142 = sbr.rel (%p139_p2) target bundleno = 32 (0x20), region = 32  ;;  %p163_p3 = scmp.lt.s32.totalorder (!%p139_p2), %s305_s14, 15  ;;  %v310_v1 = vld [vmem:[%s384_s2] ss:$0 sm:$0xff] (!%p139_p2) }
   0xd   : > { %s387_s14 = smov (!%p163_p3, %s305_s14), 15 }
   0xe   : > { %s306_s15 = sshll.u32 %s387_s14, 3 }
   0xf   : > { %s166_s20 = scalar_lea.vmem %s382_s0, %s306_s15  ;;  %s369_s25 = scalar_lea.vmem %s385_s3, %s306_s15 }
  0x10   : > { %v174_v2 = vld [vmem:[%s166_s20] sm:$0xff]  ;;  %v175_v3 = vld [vmem:[%s166_s20 + $0x8] sm:$0xff]  ;;  %v176_v4 = vld [vmem:[%s166_s20 + $0x10] sm:$0xff] }
  0x11   : > { %v189_v5 = vmul.f32 %v309_v0, %v174_v2  ;;  %v190_v6 = vmul.f32 %v309_v0, %v175_v3  ;;  %v191_v7 = vmul.f32 %v309_v0, %v176_v4  ;;  %v177_v8 = vld [vmem:[%s166_s20 + $0x18] sm:$0xff]  ;;  %v178_v9 = vld [vmem:[%s166_s20 + $0x20] sm:$0xff]  ;;  %v179_v10 = vld [vmem:[%s166_s20 + $0x28] sm:$0xff] }
  0x12   : > { %v192_v11 = vmul.f32 %v309_v0, %v177_v8  ;;  %v193_v12 = vmul.f32 %v309_v0, %v178_v9  ;;  %v194_v13 = vmul.f32 %v309_v0, %v179_v10  ;;  %v180_v14 = vld [vmem:[%s166_s20 + $0x30] sm:$0xff]  ;;  %v181_v15 = vld [vmem:[%s166_s20 + $0x38] sm:$0xff] }
  0x13   : > { %v204_v16 = vadd.f32 %v310_v1, %v189_v5  ;;  %v205_v17 = vadd.f32 %v310_v1, %v190_v6  ;;  %v206_v18 = vadd.f32 %v310_v1, %v191_v7  ;;  %v195_v19 = vmul.f32 %v309_v0, %v180_v14 }
  0x14   : > { %v207_v20 = vadd.f32 %v310_v1, %v192_v11  ;;  %v208_v21 = vadd.f32 %v310_v1, %v193_v12  ;;  %v209_v22 = vadd.f32 %v310_v1, %v194_v13  ;;  %v196_v23 = vmul.f32 %v309_v0, %v181_v15 }
  0x15   : > { %vm212_vm0 = vcmp.ge.f32.partialorder %v204_v16, 0.0  ;;  %v220_v24 = vmul.f32 0.2, %v204_v16  ;;  %vm213_vm1 = vcmp.ge.f32.partialorder %v205_v17, 0.0  ;;  %v221_v25 = vmul.f32 0.2, %v205_v17 }
  0x16   : > { %vm214_vm2 = vcmp.ge.f32.partialorder %v206_v18, 0.0  ;;  %v222_v26 = vmul.f32 0.2, %v206_v18  ;;  %vm215_vm3 = vcmp.ge.f32.partialorder %v207_v20, 0.0  ;;  %v223_v27 = vmul.f32 0.2, %v207_v20 }
  0x17   : > { %v228_v28 = vsel %vm212_vm0, %v204_v16, %v220_v24  ;;  %v229_v29 = vsel %vm213_vm1, %v205_v17, %v221_v25  ;;  %vm216_vm4 = vcmp.ge.f32.partialorder %v208_v21, 0.0  ;;  %v224_v30 = vmul.f32 0.2, %v208_v21 }
  0x18   : > { %236 = vst [vmem:[%s369_s25] sm:$0xff] %v228_v28  ;;  %237 = vst [vmem:[%s369_s25 + $0x8] sm:$0xff] %v229_v29  ;;  %v230_v31 = vsel %vm214_vm2, %v206_v18, %v222_v26  ;;  %v231_v32 = vsel %vm215_vm3, %v207_v20, %v223_v27  ;;  %vm217_vm5 = vcmp.ge.f32.partialorder %v209_v22, 0.0  ;;  %v225_v33 = vmul.f32 0.2, %v209_v22 }
  0x19   : > { %238 = vst [vmem:[%s369_s25 + $0x10] sm:$0xff] %v230_v31  ;;  %239 = vst [vmem:[%s369_s25 + $0x18] sm:$0xff] %v231_v32  ;;  %v232_v34 = vsel %vm216_vm4, %v208_v21, %v224_v30  ;;  %v210_v35 = vadd.f32 %v310_v1, %v195_v19  ;;  %v211_v36 = vadd.f32 %v310_v1, %v196_v23 }
  0x1a   : > { %240 = vst [vmem:[%s369_s25 + $0x20] sm:$0xff] %v232_v34  ;;  %v233_v37 = vsel %vm217_vm5, %v209_v22, %v225_v33 }
  0x1b   : > { %241 = vst [vmem:[%s369_s25 + $0x28] sm:$0xff] %v233_v37  ;;  %vm218_vm6 = vcmp.ge.f32.partialorder %v210_v35, 0.0  ;;  %v226_v38 = vmul.f32 0.2, %v210_v35  ;;  %vm219_vm7 = vcmp.ge.f32.partialorder %v211_v36, 0.0 }
  0x1c   : > { %v227_v39 = vmul.f32 0.2, %v211_v36 }
  0x1d   : > { %v234_v40 = vsel %vm218_vm6, %v210_v35, %v226_v38 }
  0x1e   : > { %v235_v41 = vsel %vm219_vm7, %v211_v36, %v227_v39  ;;  %242 = vst [vmem:[%s369_s25 + $0x30] sm:$0xff] %v234_v40 }
  0x1f   : > { %243 = vst [vmem:[%s369_s25 + $0x38] sm:$0xff] %v235_v41 }
  0x20 PF: > { %s13_s12 = sadd.s32 1, %s327_s12  }
  0x21   : > { %p10_p4 = scmp.ge.s32.totalorder %s13_s12, 4  }
  0x23   :  { %12 = sbr.rel (!%p10_p4) target bundleno = 1 (0x1), region = 62 }

// kernel: down_block.2
= control target key start
LH: loop header
LB: loop body
LE: loop exit
PB: predicated region body
PF: predicated region fallthrough
CT: control target
= control target key end

     0   :  { %s1212_s24 = smov 0   ;;  %s1214_s25 = smov 0   ;;  %s1361_s0 = inlined_call_operand.vmem [shape: bf16[16,9,12], index: 0, kind: input, shape index: {}]   ;;  %s1362_s1 = inlined_call_operand.vmem [shape: bf16[16,8,12], index: 1, kind: input, shape index: {}]   ;;  %s1363_s2 = inlined_call_operand.vmem [shape: bf16[12,128], index: 2, kind: input, shape index: {}]   ;;  %s1364_s3 = inlined_call_operand.vmem [shape: bf16[12,128], index: 3, kind: input, shape index: {}]   ;;  %s1365_s4 = inlined_call_operand.vmem [shape: bf16[12,128], index: 4, kind: input, shape index: {}]   ;;  %s1366_s5 = inlined_call_operand.vmem [shape: f32[128,128], index: 5, kind: output, shape index: {0}]   ;;  %s1367_s6 = inlined_call_operand.vmem [shape: f32[2,1,128], index: 6, kind: output, shape index: {1}]   ;;  %s1368_s7 = inlined_call_operand.vmem [shape: f32[2,1,128], index: 7, kind: output, shape index: {2}]  }
   0x1   :  { %s1216_s26 = smov 0  }
   0x2 LB: > { %s30_s27 = sadd.s32 1, %s1165_s25  ;;  %p1006_p0 = scmp.ge.s32.totalorder %s1169_s26, 1  ;;  %s1169_s26 = sphi %s1216_s26, %s18_s26   ;;  %s1165_s25 = sphi %s1214_s25, %s1372_s25   ;;  %s1161_s24 = sphi %s1212_s24, %s1371_s24  }
   0x3   : > { %p32_p1 = scmp.ge.s32.totalorder %s30_s27, 2  ;;  %p277_p2 = scmp.lt.s32.totalorder %s1169_s26, 3 }
   0x5   : > { %s1374_s27 = smov (%p32_p1, %s30_s27), 0  ;;  %p278_p3 = pnand %p1006_p0, %p277_p2 }
   0x6   : > { %v1136_v0 = vld [vmem:[%s1364_s3] sm:$0x3f] (!%p278_p3)   ;;  %vm543_vm0 = vcmask (!%p278_p3), 1045504   ;;  %s1007_s30 = sshll.u32 (!%p278_p3), %s1161_s24, 3  ;;  %vm530_vm1 = vcmask (!%p278_p3), 97280   ;;  %p349_p5 = scmp.lt.s32.totalorder (!%p278_p3), %s1161_s24, 1 }
   0x7   : > { %281 = sbr.rel (%p278_p3) target bundleno = 285 (0x11d), region = 40  ;;  %1107 = vmatprep.subr.msk.bf16.mxu1 (!%p278_p3), %vm543_vm0, %v1136_v0  ;;  %v1137_v1 = vld [vmem:[%s1363_s2] sm:$0x3f] (!%p278_p3)   ;;  %v545_v2 = vsel (!%p278_p3), %vm543_vm0, %v1136_v0, 0  ;;  %p326_p4 = scmp.lt.s32.totalorder (!%p278_p3), %s1007_s30, 15 }
   0x8   : > { %1060 = vmatpush3.bf16.msra.mxu1 (!%p278_p3), %v545_v2  ;;  %v1140_v3 = vld [vmem:[%s1365_s4] sm:$0x3f] (!%p278_p3)   ;;  %1108 = vmatprep.subr.msk.bf16.mxu0 (!%p278_p3), %vm543_vm0, %v1137_v1  ;;  %v650_v4 = vsel (!%p278_p3), %vm543_vm0, %v1137_v1, 0  ;;  %vm386_vm2 = vsmask.f32 (!%p278_p3), 3328 }
   0x9   : > { %1109 = vmatprep.subr.msk.bf16.mxu1 (!%p278_p3), %vm543_vm0, %v1137_v1  ;;  %1070 = vmatpush3.bf16.msra.mxu0 (!%p278_p3), %v650_v4  ;;  %vm387_vm3 = vsmask.f32 (!%p278_p3), 7440  ;;  %v749_v27 = vsel (!%p278_p3), %vm543_vm0, %v1140_v3, 0 }
   0xa   : > { %1110 = vmatprep.subr.msk.bf16.mxu0 (!%p278_p3), %vm543_vm0, %v1140_v3  ;;  %vm1284_vm4 = vmor (!%p278_p3), %vm386_vm2, %vm387_vm3 }
   0xe   : > { %s1376_s30 = smov (!%p326_p4, %s1007_s30), 15  ;;  %s1378_s24 = smov (!%p349_p5, %s1161_s24), 1 }
   0xf   : > { %s1043_s12 = sshll.u32 %s1376_s30, 3  ;;  %s1011_s13 = sshll.u32 %s1376_s30, 2 }
  0x10   : > { %s1257_s16 = scalar_lea.vmem %s1361_s0, %s1043_s12  ;;  %s1262_s19 = scalar_lea.vmem %s1362_s1, %s1011_s13 }
  0x11   : > { %v1138_v5 = vld [vmem:[%s1262_s19] sm:$0xff]   ;;  %v363_v7 = vld [vmem:[%s1257_s16 + $0x8] sm:$0xf]  ;;  %v364_v14 = vld [vmem:[%s1257_s16 + $0x10] sm:$0xf]  ;;  %s1324_s22 = scalar_lea.vmem %s1367_s6, %s1378_s24  ;;  %s1329_s29 = scalar_lea.vmem %s1368_s7, %s1378_s24 }
  0x12   : > { %v362_v6 = vld [vmem:[%s1257_s16] sm:$0xf]  ;;  %1061 = vmatprep.mubr.msk.bf16.mxu1 %vm530_vm1, %v1138_v5  ;;  %v404_v10 = vshrl.u32 %v363_v7, 16  ;;  %v407_v11 = vshll.u32 %v363_v7, 16  ;;  %v1141_v13 = vld [vmem:[%s1262_s19 + $0x8] sm:$0xff]   ;;  %v418_v20 = vshrl.u32 %v364_v14, 16  ;;  %s1338_s10 = scalar_lea.vmem %s1366_s5, %s1043_s12 }
  0x13   : > { %v390_v8 = vshrl.u32 %v362_v6, 16  ;;  %v393_v9 = vshll.u32 %v362_v6, 16  ;;  %v1023_v12 = vcombine.low %v362_v6, %v363_v7  ;;  %v365_v15 = vld [vmem:[%s1257_s16 + $0x18] sm:$0xf]  ;;  %1062 = vmatmul.mubr.msk.bf16.vlgmr.msra.gmra.mrb[0].mxu1 %vm530_vm1, %v1141_v13  ;;  %v421_v21 = vshll.u32 %v364_v14, 16  ;;  %v1143_v28 = vld [vmem:[%s1262_s19 + $0x10] sm:$0xff]  }
  0x14   : > { %v406_v18 = vrot.slane %v404_v10, 4  ;;  %v409_v19 = vrot.slane %v407_v11, 5  ;;  %v432_v22 = vshrl.u32 %v365_v15, 16  ;;  %v435_v23 = vshll.u32 %v365_v15, 16  ;;  %1090 = vmatpush3.bf16.msra.mxu1 %v650_v4  ;;  %v1144_v33 = vld [vmem:[%s1262_s19 + $0x18] sm:$0xff]   ;;  %1065 = vmatprep.mubr.msk.bf16.mxu1 %vm530_vm1, %v1143_v28 }
  0x15   : > { %v392_v16 = vrot.slane %v390_v8, 4  ;;  %v395_v17 = vrot.slane %v393_v9, 5  ;;  %1071 = vmatprep.mubr.msk.bf16.mxu0 %vm530_vm1, %v1023_v12  ;;  %v1024_v26 = vcombine.low %v364_v14, %v365_v15  ;;  %v420_v29 = vrot.slane %v418_v20, 4  ;;  %v378_v36 = vld [vmem:[%s1257_s16 + $0x4] sm:$0x1] }
  0x16   : > { %v410_v25 = vor.u32 %v409_v19, %v406_v18  ;;  %v423_v30 = vrot.slane %v421_v21, 5  ;;  %v434_v31 = vrot.slane %v432_v22, 4  ;;  %v437_v32 = vrot.slane %v435_v23, 5  ;;  %v379_v37 = vld [vmem:[%s1257_s16 + $0xc] sm:$0x1] }
  0x17   : > { %v396_v24 = vor.u32 %v395_v17, %v392_v16  ;;  %1072 = vmatmul.mubr.msk.bf16.vlgmr.msra.gmra.mrb[0].mxu0 %vm530_vm1, %v1024_v26  ;;  %v399_v40 = vshll.u32 %v378_v36, 16  ;;  %v413_v41 = vshll.u32 %v379_v37, 16  ;;  %v380_v42 = vld [vmem:[%s1257_s16 + $0x14] sm:$0x1]  ;;  %v381_v43 = vld [vmem:[%s1257_s16 + $0x1c] sm:$0x1] }
  0x18   : > { %v411_v35 = vrot.slane %v410_v25, 4  ;;  %v424_v38 = vor.u32 %v423_v30, %v420_v29  ;;  %v438_v39 = vor.u32 %v437_v32, %v434_v31  ;;  %1080 = vmatpush3.bf16.msra.mxu0 %v749_v27  ;;  %v427_v45 = vshll.u32 %v380_v42, 16  ;;  %v366_v47 = vld [vmem:[%s1257_s16 + $0x20] sm:$0xf]  ;;  %v367_v48 = vld [vmem:[%s1257_s16 + $0x28] sm:$0xf] }
  0x19   : > { %v397_v34 = vrot.slane %v396_v24, 4  ;;  %v441_v46 = vshll.u32 %v381_v43, 16  ;;  %v401_v51 = vrot.slane %v399_v40, 5  ;;  %v415_v52 = vrot.slane %v413_v41, 5  ;;  %v382_v61 = vld [vmem:[%s1257_s16 + $0x24] sm:$0x1] }
  0x1a   : > { %v425_v49 = vrot.slane %v424_v38, 4  ;;  %v439_v50 = vrot.slane %v438_v39, 4  ;;  %v429_v53 = vrot.slane %v427_v45, 5  ;;  %v446_v55 = vshrl.u32 %v366_v47, 16  ;;  %v383_v62 = vld [vmem:[%s1257_s16 + $0x2c] sm:$0x1] }
  0x1b   : > { %v443_v54 = vrot.slane %v441_v46, 5  ;;  %v449_v56 = vshll.u32 %v366_v47, 16  ;;  %1066 = vmatmul.mubr.msk.bf16.gmra.mrb[4].mxu1 %vm530_vm1, %v1144_v33  ;;  %v402_v57 = vsel %vm1284_vm4, %v397_v34, %v401_v51  ;;  %v416_v58 = vsel %vm1284_vm4, %v411_v35, %v415_v52  ;;  %v368_v3 = vld [vmem:[%s1257_s16 + $0x30] sm:$0xf]  ;;  %v369_v4 = vld [vmem:[%s1257_s16 + $0x38] sm:$0xf] }
  0x1c   : > { %v460_v59 = vshrl.u32 %v367_v48, 16  ;;  %v463_v60 = vshll.u32 %v367_v48, 16  ;;  %v1032_v63 = vcombine.low %v402_v57, %v416_v58  ;;  %v430_v0 = vsel %vm1284_vm4, %v425_v49, %v429_v53  ;;  %v384_v8 = vld [vmem:[%s1257_s16 + $0x34] sm:$0x1]  ;;  %v385_v15 = vld [vmem:[%s1257_s16 + $0x3c] sm:$0x1] }
  0x1d   : > { %v444_v1 = vsel %vm1284_vm4, %v439_v50, %v443_v54  ;;  %v448_v2 = vrot.slane %v446_v55, 4  ;;  %v451_v5 = vrot.slane %v449_v56, 5  ;;  %v1025_v10 = vcombine.low %v366_v47, %v367_v48 }
  0x1e   : > { %v462_v6 = vrot.slane %v460_v59, 4  ;;  %v465_v7 = vrot.slane %v463_v60, 5  ;;  %1081 = vmatprep.mubr.msk.bf16.mxu0 %vm530_vm1, %v1032_v63  ;;  %v1033_v9 = vcombine.low %v430_v0, %v444_v1  ;;  %v455_v11 = vshll.u32 %v382_v61, 16 }
  0x1f   : > { %v469_v12 = vshll.u32 %v383_v62, 16  ;;  %v452_v13 = vor.u32 %v451_v5, %v448_v2  ;;  %v474_v16 = vshrl.u32 %v368_v3, 16  ;;  %v477_v17 = vshll.u32 %v368_v3, 16  ;;  %1075 = vmatprep.mubr.msk.bf16.mxu1 %vm530_vm1, %v1025_v10 }
  0x20   : > { %v466_v14 = vor.u32 %v465_v7, %v462_v6  ;;  %v457_v18 = vrot.slane %v455_v11, 5  ;;  %v483_v20 = vshll.u32 %v384_v8, 16  ;;  %v488_v21 = vshrl.u32 %v369_v4, 16 }
  0x21   : > { %v471_v19 = vrot.slane %v469_v12, 5  ;;  %v453_v22 = vrot.slane %v452_v13, 4  ;;  %v476_v24 = vrot.slane %v474_v16, 4  ;;  %v479_v25 = vrot.slane %v477_v17, 5 }
  0x22   : > { %v467_v23 = vrot.slane %v466_v14, 4  ;;  %v490_v26 = vrot.slane %v488_v21, 4  ;;  %v491_v27 = vshll.u32 %v369_v4, 16  ;;  %v497_v28 = vshll.u32 %v385_v15, 16 }
  0x23   : > { %1082 = vmatmul.mubr.msk.bf16.vlgmr.msra.gmra.mrb[0].mxu0 %vm530_vm1, %v1033_v9  ;;  %v458_v29 = vsel %vm1284_vm4, %v453_v22, %v457_v18  ;;  %v1026_v31 = vcombine.low %v368_v3, %v369_v4  ;;  %v480_v32 = vor.u32 %v479_v25, %v476_v24  ;;  %v485_v34 = vrot.slane %v483_v20, 5 }
  0x24   : > { %v472_v30 = vsel %vm1284_vm4, %v467_v23, %v471_v19  ;;  %v493_v35 = vrot.slane %v491_v27, 5  ;;  %v499_v38 = vrot.slane %v497_v28, 5  ;;  %v1171_v43 = vmov 0.0  }
  0x25   : > { %v1034_v33 = vcombine.low %v458_v29, %v472_v30  ;;  %v481_v36 = vrot.slane %v480_v32, 4  ;;  %360 = vst [vmem:[%s1324_s22] sm:$0x1] %v1171_v43  ;;  %361 = vst [vmem:[%s1329_s29] sm:$0x1] %v1171_v43 }
  0x26   : > { %v494_v37 = vor.u32 %v493_v35, %v490_v26 }
  0x27   : > { %1085 = vmatprep.mubr.msk.bf16.mxu0 %vm530_vm1, %v1034_v33  ;;  %1076 = vmatmul.mubr.msk.bf16.vlgmr.msra.gmra.mrb[4].mxu1 %vm530_vm1, %v1026_v31  ;;  %v486_v39 = vsel %vm1284_vm4, %v481_v36, %v485_v34 }
  0x28   : > { %v495_v40 = vrot.slane %v494_v37, 4 }
  0x2a   : > { %v500_v41 = vsel %vm1284_vm4, %v495_v40, %v499_v38 }
  0x2b   : > { %v1035_v42 = vcombine.low %v486_v39, %v500_v41 }
  0x2c   : > { %v832_v35 = vld [vmem:[%s1324_s22] sm:$0x1] }
  0x2d   : > { %1086 = vmatmul.mubr.msk.bf16.gmra.mrb[4].mxu0 %vm530_vm1, %v1035_v42  ;;  %v848_v38 = vld [vmem:[%s1329_s29] sm:$0x1] }
  0xe6   : > { %v1063_v44 = vpop.f32.mrb[0].mxu1 }
  0xe7   : > { %v581_v45 = vpop.f32.mrb[1].mxu1 }
  0xe8   : > { %v1064_v46 = vpop.f32.mrb[2].mxu1 }
  0xe9   : > { %v584_v47 = vpop.f32.mrb[3].mxu1 }
  0xf6   : > { %v1083_v48 = vpop.f32.mrb[0].mxu0 }
  0xf7   : > { %v1091_v49 = vadd.f32 %v1083_v48, %v1063_v44  ;;  %v785_v50 = vpop.f32.mrb[1].mxu0 }
  0xf8   : > { %v1092_v51 = vadd.f32 %v785_v50, %v581_v45  ;;  %v1084_v52 = vpop.f32.mrb[2].mxu0 }
  0xf9   : > { %826 = vst [vmem:[%s1338_s10 + $0x10] sm:$0xff] %v1091_v49  ;;  %v1093_v53 = vadd.f32 %v1084_v52, %v1064_v46  ;;  %v788_v54 = vpop.f32.mrb[3].mxu0  ;;  %v851_v62 = vmul.f32 %v1091_v49, %v1091_v49 }
  0xfa   : > { %824 = vst [vmem:[%s1338_s10] sm:$0xff] %v1092_v51  ;;  %v1094_v55 = vadd.f32 %v788_v54, %v584_v47  ;;  %v1077_v56 = vpop.f32.mrb[4].mxu1  ;;  %v849_v57 = vmul.f32 %v1092_v51, %v1092_v51 }
  0xfb   : > { %827 = vst [vmem:[%s1338_s10 + $0x18] sm:$0xff] %v1093_v53  ;;  %v702_v60 = vpop.f32.mrb[5].mxu1  ;;  %v852_v2 = vmul.f32 %v1093_v53, %v1093_v53 }
  0xfc   : > { %825 = vst [vmem:[%s1338_s10 + $0x8] sm:$0xff] %v1094_v55  ;;  %v833_v58 = vadd.f32 %v1094_v55, %v1092_v51  ;;  %v850_v59 = vmul.f32 %v1094_v55, %v1094_v55  ;;  %v1078_v61 = vpop.f32.mrb[6].mxu1 }
  0xfd   : > { %v705_v1 = vpop.f32.mrb[7].mxu1 }
  0xfe   : > { %v834_v63 = vadd.f32 %v1091_v49, %v833_v58  ;;  %v857_v0 = vadd.f32 %v850_v59, %v849_v57 }
 0x100   : > { %v858_v3 = vadd.f32 %v857_v0, %v851_v62  ;;  %v835_v4 = vadd.f32 %v1093_v53, %v834_v63  ;;  %v1087_v5 = vpop.f32.mrb[4].mxu0 }
 0x101   : > { %v1095_v6 = vadd.f32 %v1087_v5, %v1077_v56  ;;  %v801_v7 = vpop.f32.mrb[5].mxu0 }
 0x102   : > { %v859_v8 = vadd.f32 %v858_v3, %v852_v2  ;;  %v1096_v9 = vadd.f32 %v801_v7, %v702_v60  ;;  %v1088_v10 = vpop.f32.mrb[6].mxu0 }
 0x103   : > { %830 = vst [vmem:[%s1338_s10 + $0x30] sm:$0xff] %v1095_v6  ;;  %v1097_v11 = vadd.f32 %v1088_v10, %v1078_v61  ;;  %v804_v12 = vpop.f32.mrb[7].mxu0  ;;  %v855_v19 = vmul.f32 %v1095_v6, %v1095_v6 }
 0x104   : > { %828 = vst [vmem:[%s1338_s10 + $0x20] sm:$0xff] %v1096_v9  ;;  %v836_v13 = vadd.f32 %v1096_v9, %v835_v4  ;;  %v853_v14 = vmul.f32 %v1096_v9, %v1096_v9  ;;  %v1098_v15 = vadd.f32 %v804_v12, %v705_v1 }
 0x105   : > { %831 = vst [vmem:[%s1338_s10 + $0x38] sm:$0xff] %v1097_v11  ;;  %v856_v22 = vmul.f32 %v1097_v11, %v1097_v11 }
 0x106   : > { %v860_v16 = vadd.f32 %v859_v8, %v853_v14  ;;  %829 = vst [vmem:[%s1338_s10 + $0x28] sm:$0xff] %v1098_v15  ;;  %v837_v17 = vadd.f32 %v1098_v15, %v836_v13  ;;  %v854_v18 = vmul.f32 %v1098_v15, %v1098_v15 }
 0x108   : > { %v838_v20 = vadd.f32 %v1095_v6, %v837_v17  ;;  %v861_v21 = vadd.f32 %v860_v16, %v854_v18 }
 0x10a   : > { %v839_v23 = vadd.f32 %v1097_v11, %v838_v20  ;;  %v862_v24 = vadd.f32 %v861_v21, %v855_v19 }
 0x10c   : > { %v840_v25 = vrot.slane %v839_v23, 4  ;;  %v863_v26 = vadd.f32 %v862_v24, %v856_v22 }
 0x10e   : > { %v841_v27 = vadd.f32 %v840_v25, %v839_v23  ;;  %v864_v28 = vrot.slane %v863_v26, 4 }
 0x110   : > { %v842_v29 = vrot.slane %v841_v27, 2  ;;  %v865_v30 = vadd.f32 %v864_v28, %v863_v26 }
 0x112   : > { %v843_v31 = vadd.f32 %v842_v29, %v841_v27  ;;  %v866_v32 = vrot.slane %v865_v30, 2 }
 0x114   : > { %v844_v33 = vrot.slane %v843_v31, 1  ;;  %v867_v34 = vadd.f32 %v866_v32, %v865_v30 }
 0x116   : > { %v845_v36 = vadd.f32 %v844_v33, %v843_v31  ;;  %v868_v37 = vrot.slane %v867_v34, 1 }
 0x118   : > { %v846_v39 = vadd.f32 %v845_v36, %v832_v35  ;;  %v869_v40 = vadd.f32 %v868_v37, %v867_v34 }
 0x11a   : > { %847 = vst [vmem:[%s1324_s22] sm:$0x1] %v846_v39  ;;  %v870_v41 = vadd.f32 %v869_v40, %v848_v38 }
 0x11c   : > { %871 = vst [vmem:[%s1329_s29] sm:$0x1] %v870_v41 }
 0x11d PF: > { %s18_s26 = sadd.s32 1, %s1169_s26   ;;  %s1371_s24 = smov %s1165_s25 }
 0x11e   : > { %p15_p6 = scmp.ge.s32.totalorder %s18_s26, 4   ;;  %s1372_s25 = smov %s1374_s27 }
 0x120   :  { %17 = sbr.rel (!%p15_p6) target bundleno = 2 (0x2), region = 101 }

</bundles_post_ra>
